<compile_context>
chip_gen: v7x
topology: tpu7x:2x2x1
jax: 0.10.0
libtpu: 0.0.40
codegen_flags: <defaults>
</compile_context>

<pallas_src>
import functools

import jax
import jax.numpy as jnp
from jax.experimental import pallas as pl
from jax.experimental.pallas import tpu as pltpu


# ---------------------------------------------------------------------------
# Main fused kernel: whole (Nb, C, S_pad) block resident in VMEM.
# ---------------------------------------------------------------------------
def _fused_kernel(x_ref, w1_ref, w2_ref, y_ref, att_ref, pool_sc, *, s_true):
    # x_ref: (Nb, C, S_pad)   w1_ref: (Cr, C) f32   w2_ref: (C, Cr) f32
    # y_ref: (Nb, C, S_pad)   att_ref: (Nb, C, 1)   pool_sc: (C, 2*Nb) f32
    nb, c, s_pad = x_ref.shape
    inv_s = 1.0 / float(s_true)

    masked = s_pad != s_true
    if masked:  # hoisted, static
        valid = jax.lax.broadcasted_iota(jnp.int32, (c, s_pad), 1) < s_true

    # Pooling pass: lane reductions leave C on sublanes; stash the (C,1)
    # columns into a small VMEM scratch (avg columns 0..Nb-1, max Nb..2Nb-1).
    for n in range(nb):
        xn = x_ref[n]                                              # (C, S_pad)
        pool_sc[:, n:n + 1] = (
            jnp.sum(xn, axis=-1, keepdims=True, dtype=jnp.float32) * inv_s)
        if masked:
            xn = jnp.where(valid, xn, jnp.array(-jnp.inf, dtype=xn.dtype))
        pool_sc[:, nb + n:nb + n + 1] = (
            jnp.max(xn, axis=-1, keepdims=True).astype(jnp.float32))

    # Shared fc over [avg | max]: one pair of small matmuls in column layout,
    # weights in natural orientation (lhs contracts on last, rhs on first dim).
    h = jnp.maximum(
        jnp.dot(w1_ref[...], pool_sc[...], preferred_element_type=jnp.float32),
        0.0)                                                        # (Cr, 2*Nb)
    o = jnp.dot(w2_ref[...], h, preferred_element_type=jnp.float32)  # (C, 2*Nb)
    att = jax.nn.sigmoid(o[:, :nb] + o[:, nb:])                      # (C, Nb) f32

    # Streaming multiply: re-read x_ref (fresh loads; the pooling values are
    # dead by now, so nothing large stays live across the matmul chain).
    for n in range(nb):
        a_col = att[:, n:n + 1]                                     # (C, 1)
        att_ref[n] = a_col.astype(att_ref.dtype)
        y_ref[n] = (x_ref[n] * a_col.astype(x_ref.dtype)).astype(y_ref.dtype)


# ---------------------------------------------------------------------------
# Spatial-chunked fallback (two passes over x) for blocks too big for VMEM.
# ---------------------------------------------------------------------------
def _pool_fc_kernel(x_ref, w1_ref, w2_ref, att_ref, pool_sc, *,
                    s_true, s_chunk, masked):
    # grid=(N, n_chunks); x_ref: (1, C, Sc); att_ref: (1, C, 1); pool_sc: (C, 2)
    ci = pl.program_id(1)
    c = x_ref.shape[1]

    @pl.when(ci == 0)
    def _():
        pool_sc[:, 0:1] = jnp.zeros((c, 1), jnp.float32)
        pool_sc[:, 1:2] = jnp.full((c, 1), -jnp.inf, jnp.float32)

    x = x_ref[0]                                                    # (C, Sc)
    pool_sc[:, 0:1] += jnp.sum(x, axis=-1, keepdims=True, dtype=jnp.float32)
    if masked:  # only the last chunk actually carries zero padding
        pos = ci * s_chunk + jax.lax.broadcasted_iota(jnp.int32, x.shape, 1)
        x = jnp.where(pos < s_true, x, jnp.array(-jnp.inf, dtype=x.dtype))
    pool_sc[:, 1:2] = jnp.maximum(
        pool_sc[:, 1:2], jnp.max(x, axis=-1, keepdims=True).astype(jnp.float32))

    @pl.when(ci == pl.num_programs(1) - 1)
    def _():
        pool_sc[:, 0:1] *= 1.0 / float(s_true)                      # sum -> mean
        h = jnp.maximum(
            jnp.dot(w1_ref[...], pool_sc[...],
                    preferred_element_type=jnp.float32), 0.0)       # (Cr, 2)
        o = jnp.dot(w2_ref[...], h, preferred_element_type=jnp.float32)  # (C, 2)
        att_ref[0] = jax.nn.sigmoid(o[:, 0:1] + o[:, 1:2]).astype(att_ref.dtype)


def _scale_kernel(x_ref, att_ref, y_ref):
    # x_ref: (1, C, Sc), att_ref: (1, C, 1), y_ref: (1, C, Sc)
    a = att_ref[0].astype(x_ref.dtype)                              # (C, 1)
    y_ref[0] = (x_ref[0] * a).astype(y_ref.dtype)


# ---------------------------------------------------------------------------
# Wrapper helpers.
# ---------------------------------------------------------------------------
def _vmem_capacity_bytes():
    """Physical VMEM of this generation; conservative (v7x) fallback."""
    try:
        cap = getattr(pltpu.get_tpu_info(), "vmem_capacity_bytes", None)
        if cap:
            return int(cap)
    except Exception:
        pass
    return 64 << 20


def _pick_batch_block(n, per_item_bytes, budget_bytes, max_nb=16):
    """Largest divisor of n (capped) whose block fits the budget, preferring
    >= 4 grid steps (>= 2 per TensorCore on v7x megacore), then >= 2 steps."""
    divisors = [d for d in range(1, min(n, max_nb) + 1) if n % d == 0]
    fitting = [d for d in divisors if d * per_item_bytes <= budget_bytes]
    if not fitting:
        return 1
    for min_steps in (4, 2):
        ok = [d for d in fitting if n // d >= min_steps]
        if ok:
            return max(ok)
    return max(fitting)


def _channel_attention_chunked(xf, w1f, w2f, S, S_pad, itemsize,
                               budget, usable, margin):
    N, C, _ = xf.shape
    Cr = w1f.shape[0]
    dtype = xf.dtype

    # Largest 128-multiple chunk that divides S_pad and fits the budget.
    n128 = S_pad // 128
    k = next((k for k in range(n128, 0, -1)
              if n128 % k == 0 and C * 128 * k * itemsize <= budget), 1)
    Sc = 128 * k
    n_chunks = S_pad // Sc
    chunk_bytes = C * Sc * itemsize
    vmem_limit = int(min(usable, max(32 << 20, 4 * chunk_bytes + margin)))
    masked = S_pad != S

    # Pass 1: chunked pooling reduction + fc + sigmoid -> attention.
    att = pl.pallas_call(
        functools.partial(_pool_fc_kernel, s_true=S, s_chunk=Sc, masked=masked),
        out_shape=jax.ShapeDtypeStruct((N, C, 1), dtype),
        grid_spec=pltpu.PrefetchScalarGridSpec(
            num_scalar_prefetch=0,
            grid=(N, n_chunks),
            in_specs=[
                pl.BlockSpec((1, C, Sc), lambda n, c: (n, 0, c)),
                pl.BlockSpec((Cr, C), lambda n, c: (0, 0)),
                pl.BlockSpec((C, Cr), lambda n, c: (0, 0)),
            ],
            out_specs=pl.BlockSpec((1, C, 1), lambda n, c: (n, 0, 0)),
            scratch_shapes=[pltpu.VMEM((C, 2), jnp.float32)],
        ),
        compiler_params=pltpu.CompilerParams(
            dimension_semantics=("parallel", "arbitrary"),
            vmem_limit_bytes=vmem_limit,
        ),
    )(xf, w1f, w2f)

    # Pass 2: streaming y = x * att (second read of x, lane-dense stores).
    y_pad = pl.pallas_call(
        _scale_kernel,
        out_shape=jax.ShapeDtypeStruct((N, C, S_pad), dtype),
        grid_spec=pltpu.PrefetchScalarGridSpec(
            num_scalar_prefetch=0,
            grid=(N, n_chunks),
            in_specs=[
                pl.BlockSpec((1, C, Sc), lambda n, c: (n, 0, c)),
                pl.BlockSpec((1, C, 1), lambda n, c: (n, 0, 0)),
            ],
            out_specs=pl.BlockSpec((1, C, Sc), lambda n, c: (n, 0, c)),
        ),
        compiler_params=pltpu.CompilerParams(
            dimension_semantics=("parallel", "parallel"),
            vmem_limit_bytes=vmem_limit,
        ),
    )(xf, att)

    return y_pad, att


def channel_attention(x, w1, w2, *, batch_block=None, force_chunked=False):
    """x: (N, C, H, W); w1: (C//r, C); w2: (C, C//r)  ->  (x * att, att)."""
    N, C, H, W = x.shape
    S = H * W
    Cr = w1.shape[0]
    assert w1.shape == (Cr, C) and w2.shape == (C, Cr)

    # Lane-dense layout: pad the spatial axis to a multiple of 128 so x/y block
    # stores are unmasked and DMA rows are dense (no-op when already aligned).
    S_pad = max(128, ((S + 127) // 128) * 128)
    xf = x.reshape(N, C, S)
    if S_pad != S:
        xf = jnp.pad(xf, ((0, 0), (0, 0), (0, S_pad - S)))

    # Pre-cast weights on the host (drops a per-grid-step cast in the kernel).
    w1f = w1.astype(jnp.float32)
    w2f = w2.astype(jnp.float32)

    itemsize = jnp.dtype(x.dtype).itemsize
    per_item = C * S_pad * itemsize

    # Size blocks off the actual VMEM of this generation:
    # resident ~= 2x in-block + 2x out-block (double buffered) + weights/att.
    cap = _vmem_capacity_bytes()
    usable = (cap * 3) // 4                     # headroom below physical VMEM
    margin = 8 << 20                            # weights, att, compiler scratch
    budget = max(1 << 20, min(24 << 20, (usable - margin) // 4))

    if force_chunked or per_item > budget:
        y_pad, att = _channel_attention_chunked(
            xf, w1f, w2f, S, S_pad, itemsize, budget, usable, margin)
    else:
        if batch_block is not None:
            assert N % batch_block == 0, "batch_block must divide N"
            Nb = batch_block
        else:
            Nb = _pick_batch_block(N, per_item, budget)
        block_bytes = Nb * per_item
        vmem_limit = int(min(usable, max(32 << 20, 4 * block_bytes + margin)))

        y_pad, att = pl.pallas_call(
            functools.partial(_fused_kernel, s_true=S),
            out_shape=(
                jax.ShapeDtypeStruct((N, C, S_pad), x.dtype),
                jax.ShapeDtypeStruct((N, C, 1), x.dtype),
            ),
            grid_spec=pltpu.PrefetchScalarGridSpec(
                num_scalar_prefetch=0,
                grid=(N // Nb,),
                in_specs=[
                    pl.BlockSpec((Nb, C, S_pad), lambda n: (n, 0, 0)),
                    pl.BlockSpec((Cr, C), lambda n: (0, 0)),
                    pl.BlockSpec((C, Cr), lambda n: (0, 0)),
                ],
                out_specs=[
                    pl.BlockSpec((Nb, C, S_pad), lambda n: (n, 0, 0)),
                    pl.BlockSpec((Nb, C, 1), lambda n: (n, 0, 0)),
                ],
                scratch_shapes=[pltpu.VMEM((C, 2 * Nb), jnp.float32)],
            ),
            compiler_params=pltpu.CompilerParams(
                dimension_semantics=("parallel",),
                vmem_limit_bytes=vmem_limit,
            ),
        )(xf, w1f, w2f)

    y = y_pad[..., :S] if S_pad != S else y_pad
    return y.reshape(N, C, H, W), att.reshape(N, C, 1, 1)


def channel_attention_ref(x, w1, w2):
    avg = jnp.mean(x, axis=(2, 3))                                   # (N, C)
    mx = jnp.max(x, axis=(2, 3))                                     # (N, C)

    def fc(v):
        return jnp.maximum(v @ w1.T, 0.0) @ w2.T

    att = jax.nn.sigmoid(fc(avg) + fc(mx))[:, :, None, None]
    return x * att, att


if __name__ == "__main__":
    N, C, reduction = 2, 64, 16
    Cr = C // reduction

    key = jax.random.PRNGKey(0)
    kx, k1, k2, kx2 = jax.random.split(key, 4)
    w1 = jax.random.normal(k1, (Cr, C), dtype=jnp.float32) * (1.0 / jnp.sqrt(C))
    w2 = jax.random.normal(k2, (C, Cr), dtype=jnp.float32) * (1.0 / jnp.sqrt(Cr))

    # 1) Lane-aligned spatial size (16*16 = 256): fused path, no padding.
    x = jax.random.normal(kx, (N, C, 16, 16), dtype=jnp.float32)
    y, att = channel_attention(x, w1, w2)
    jax.block_until_ready((y, att))
    y_r, att_r = channel_attention_ref(x, w1, w2)
    assert y.shape == x.shape and att.shape == (N, C, 1, 1)
    assert jnp.allclose(y, y_r, atol=1e-5, rtol=1e-5)
    assert jnp.allclose(att, att_r, atol=1e-5, rtol=1e-5)

    # 2) Non-aligned spatial size (7*7 = 49): padded + masked fused path.
    x2 = jax.random.normal(kx2, (N, C, 7, 7), dtype=jnp.float32)
    y2, att2 = channel_attention(x2, w1, w2)
    jax.block_until_ready((y2, att2))
    y2_r, att2_r = channel_attention_ref(x2, w1, w2)
    assert jnp.allclose(y2, y2_r, atol=1e-5, rtol=1e-5)
    assert jnp.allclose(att2, att2_r, atol=1e-5, rtol=1e-5)

    # 3) Spatial-chunked fallback, forced at small shapes to validate it.
    y3, att3 = channel_attention(x2, w1, w2, force_chunked=True)
    jax.block_until_ready((y3, att3))
    assert jnp.allclose(y3, y2_r, atol=1e-5, rtol=1e-5)
    assert jnp.allclose(att3, att2_r, atol=1e-5, rtol=1e-5)

    print("KERNEL_OK")
</pallas_src>

<mosaic_0001>
module attributes {stable_mosaic.version = 11 : i64} {
  func.func @_fused_kernel(%arg0: i32, %arg1: memref<1x64x256xf32, #tpu.memory_space<vmem>>, %arg2: memref<4x64xf32, #tpu.memory_space<vmem>>, %arg3: memref<64x4xf32, #tpu.memory_space<vmem>>, %arg4: memref<1x64x256xf32, #tpu.memory_space<vmem>>, %arg5: memref<1x64x1xf32, #tpu.memory_space<vmem>>, %arg6: memref<64x2xf32, #tpu.memory_space<vmem>>) attributes {dimension_semantics = [#tpu.dimension_semantics<parallel>], iteration_bounds = array<i64: 2>, scalar_prefetch = 0 : i64, scratch_operands = 1 : i64, tpu.core_type = #tpu.core_type<tc>, window_params = [{transform_indices = @transform_0, window_bounds = array<i64: 1, 64, 256>}, {pipeline_mode = #tpu.pipeline_mode<synchronous>, transform_indices = @transform_1, window_bounds = array<i64: 4, 64>}, {pipeline_mode = #tpu.pipeline_mode<synchronous>, transform_indices = @transform_2, window_bounds = array<i64: 64, 4>}, {transform_indices = @transform_3, window_bounds = array<i64: 1, 64, 256>}, {transform_indices = @transform_4, window_bounds = array<i64: 1, 64, 1>}]} {
    %c0 = arith.constant 0 : index
    %c0_0 = arith.constant 0 : index
    %c0_1 = arith.constant 0 : index
    %0 = vector.load %arg1[%c0, %c0_0, %c0_1] : memref<1x64x256xf32, #tpu.memory_space<vmem>>, vector<1x64x256xf32>
    %1 = vector.shape_cast %0 : vector<1x64x256xf32> to vector<64x256xf32>
    %cst = arith.constant dense<0.000000e+00> : vector<64xf32>
    %2 = vector.multi_reduction <add>, %1, %cst [1] : vector<64x256xf32> to vector<64xf32>
    %3 = vector.shape_cast %2 : vector<64xf32> to vector<64x1xf32>
    %cst_2 = arith.constant 3.906250e-03 : f32
    %4 = vector.broadcast %cst_2 : f32 to vector<64x1xf32>
    %5 = arith.mulf %3, %4 : vector<64x1xf32>
    %c0_3 = arith.constant 0 : index
    %c0_4 = arith.constant 0 : index
    %6 = vector.load %arg6[%c0_3, %c0_4] : memref<64x2xf32, #tpu.memory_space<vmem>>, vector<64x1xf32>
    tpu.vector_store %arg6[%c0_3, %c0_4], %5 {strides = array<i32>} : memref<64x2xf32, #tpu.memory_space<vmem>>, vector<64x1xf32>,
    %cst_5 = arith.constant dense<0xFF800000> : vector<64xf32>
    %7 = vector.multi_reduction <maximumf>, %1, %cst_5 [1] : vector<64x256xf32> to vector<64xf32>
    %8 = vector.shape_cast %7 : vector<64xf32> to vector<64x1xf32>
    %c0_6 = arith.constant 0 : index
    %c1 = arith.constant 1 : index
    %9 = vector.load %arg6[%c0_6, %c1] : memref<64x2xf32, #tpu.memory_space<vmem>>, vector<64x1xf32>
    tpu.vector_store %arg6[%c0_6, %c1], %8 {strides = array<i32>} : memref<64x2xf32, #tpu.memory_space<vmem>>, vector<64x1xf32>,
    %c0_7 = arith.constant 0 : index
    %c0_8 = arith.constant 0 : index
    %10 = vector.load %arg2[%c0_7, %c0_8] : memref<4x64xf32, #tpu.memory_space<vmem>>, vector<4x64xf32>
    %c0_9 = arith.constant 0 : index
    %c0_10 = arith.constant 0 : index
    %11 = vector.load %arg6[%c0_9, %c0_10] : memref<64x2xf32, #tpu.memory_space<vmem>>, vector<64x2xf32>
    %cst_11 = arith.constant dense<0.000000e+00> : vector<4x2xf32>
    %12 = tpu.matmul %10, %11, %cst_11 {dimension_numbers = #tpu.dot_dimension_numbers<[1], [0], [0], [1], [0, 0, 1, 1], [], []>} : vector<4x64xf32>, vector<64x2xf32>, vector<4x2xf32> -> vector<4x2xf32>
    %cst_12 = arith.constant 0.000000e+00 : f32
    %13 = vector.broadcast %cst_12 : f32 to vector<4x2xf32>
    %14 = arith.maximumf %12, %13 : vector<4x2xf32>
    %c0_13 = arith.constant 0 : index
    %c0_14 = arith.constant 0 : index
    %15 = vector.load %arg3[%c0_13, %c0_14] : memref<64x4xf32, #tpu.memory_space<vmem>>, vector<64x4xf32>
    %cst_15 = arith.constant dense<0.000000e+00> : vector<64x2xf32>
    %16 = tpu.matmul %15, %14, %cst_15 {dimension_numbers = #tpu.dot_dimension_numbers<[1], [0], [0], [1], [0, 0, 1, 1], [], []>} : vector<64x4xf32>, vector<4x2xf32>, vector<64x2xf32> -> vector<64x2xf32>
    %17 = vector.extract_strided_slice %16 {offsets = [0, 0], sizes = [64, 1], strides = [1, 1]} : vector<64x2xf32> to vector<64x1xf32>
    %18 = vector.extract_strided_slice %16 {offsets = [0, 1], sizes = [64, 1], strides = [1, 1]} : vector<64x2xf32> to vector<64x1xf32>
    %19 = arith.addf %17, %18 : vector<64x1xf32>
    %20 = arith.negf %19 : vector<64x1xf32>
    %21 = math.exp %20 : vector<64x1xf32>
    %cst_16 = arith.constant 1.000000e+00 : f32
    %22 = vector.broadcast %cst_16 : f32 to vector<64x1xf32>
    %23 = arith.addf %22, %21 : vector<64x1xf32>
    %24 = arith.divf %22, %23 : vector<64x1xf32>
    %c0_17 = arith.constant 0 : index
    %c0_18 = arith.constant 0 : index
    %c0_19 = arith.constant 0 : index
    %25 = vector.load %arg5[%c0_17, %c0_18, %c0_19] : memref<1x64x1xf32, #tpu.memory_space<vmem>>, vector<1x64x1xf32>
    %26 = vector.shape_cast %25 : vector<1x64x1xf32> to vector<64x1xf32>
    %27 = vector.shape_cast %24 : vector<64x1xf32> to vector<1x64x1xf32>
    tpu.vector_store %arg5[%c0_17, %c0_18, %c0_19], %27 {strides = array<i32>} : memref<1x64x1xf32, #tpu.memory_space<vmem>>, vector<1x64x1xf32>,
    %c0_20 = arith.constant 0 : index
    %c0_21 = arith.constant 0 : index
    %c0_22 = arith.constant 0 : index
    %28 = vector.load %arg1[%c0_20, %c0_21, %c0_22] : memref<1x64x256xf32, #tpu.memory_space<vmem>>, vector<1x64x256xf32>
    %29 = vector.shape_cast %28 : vector<1x64x256xf32> to vector<64x256xf32>
    %30 = vector.broadcast %24 : vector<64x1xf32> to vector<64x256xf32>
    %31 = arith.mulf %29, %30 : vector<64x256xf32>
    %c0_23 = arith.constant 0 : index
    %c0_24 = arith.constant 0 : index
    %c0_25 = arith.constant 0 : index
    %32 = vector.load %arg4[%c0_23, %c0_24, %c0_25] : memref<1x64x256xf32, #tpu.memory_space<vmem>>, vector<1x64x256xf32>
    %33 = vector.shape_cast %32 : vector<1x64x256xf32> to vector<64x256xf32>
    %34 = vector.shape_cast %31 : vector<64x256xf32> to vector<1x64x256xf32>
    tpu.vector_store %arg4[%c0_23, %c0_24, %c0_25], %34 {strides = array<i32>} : memref<1x64x256xf32, #tpu.memory_space<vmem>>, vector<1x64x256xf32>,
    return
  }
  func.func @transform_0(%arg0: i32) -> (i32, i32, i32) {
    %c0_i32 = arith.constant 0 : i32
    %c0_i32_0 = arith.constant 0 : i32
    %c0_i32_1 = arith.constant 0 : i32
    return %arg0, %c0_i32, %c0_i32_0 : i32, i32, i32
  }
  func.func @transform_1(%arg0: i32) -> (i32, i32) {
    %c0_i32 = arith.constant 0 : i32
    %c0_i32_0 = arith.constant 0 : i32
    %c0_i32_1 = arith.constant 0 : i32
    return %c0_i32, %c0_i32_0 : i32, i32
  }
  func.func @transform_2(%arg0: i32) -> (i32, i32) {
    %c0_i32 = arith.constant 0 : i32
    %c0_i32_0 = arith.constant 0 : i32
    %c0_i32_1 = arith.constant 0 : i32
    return %c0_i32, %c0_i32_0 : i32, i32
  }
  func.func @transform_3(%arg0: i32) -> (i32, i32, i32) {
    %c0_i32 = arith.constant 0 : i32
    %c0_i32_0 = arith.constant 0 : i32
    %c0_i32_1 = arith.constant 0 : i32
    return %arg0, %c0_i32, %c0_i32_0 : i32, i32, i32
  }
  func.func @transform_4(%arg0: i32) -> (i32, i32, i32) {
    %c0_i32 = arith.constant 0 : i32
    %c0_i32_0 = arith.constant 0 : i32
    %c0_i32_1 = arith.constant 0 : i32
    return %arg0, %c0_i32, %c0_i32_0 : i32, i32, i32
  }
}

</mosaic_0001>

<bundles_post_ra>
// kernel: tpu_custom_call.1
= control target key start
LH: loop header
LB: loop body
LE: loop exit
PB: predicated region body
PF: predicated region fallthrough
CT: control target
= control target key end

     0   :  { %10 = vsyncpa [#allocation4], 0  ;;  %s1529_s0 = inlined_call_operand.hbm [shape: f32[2,64,256], index: 0, kind: input, shape index: {}]   ;;  %s1530_s1 = inlined_call_operand.vmem [shape: f32[4,64], index: 1, kind: input, shape index: {}]   ;;  %s1531_s2 = inlined_call_operand.vmem [shape: f32[64,4], index: 2, kind: input, shape index: {}]   ;;  %s1532_s3 = inlined_call_operand.hbm [shape: f32[2,64,256], index: 3, kind: output, shape index: {0}]   ;;  %s1533_s4 = inlined_call_operand.vmem [shape: f32[2,64,1], index: 4, kind: output, shape index: {1}]  }
   0x1   :  { %12 = vsyncpa [#allocation4 + $0x1], 0 }
   0x2   :  { %13 = vsyncpa [#allocation5], 0 }
   0x3   :  { %15 = vsyncpa [#allocation5 + $0x1], 0  ;;  %s1172_s15 = smov 0   ;;  %s1174_s16 = smov 0  }
   0x4   :  { %s1176_s17 = smov 0   ;;  %s1178_s18 = smov 0  }
   0x5 LB: > { %s1193_s19 = sadd.s32 4294967295, %s1134_s18   ;;  %s849_s20 = sadd.s32 4294967294, %s1134_s18   ;;  %s1134_s18 = sphi %s1178_s18, %s1546_s18   ;;  %s1130_s17 = sphi %s1176_s17, %s1545_s17   ;;  %s1126_s16 = sphi %s1174_s16, %s1544_s16   ;;  %s1122_s15 = sphi %s1172_s15, %s1543_s15  }
   0x6   : > { %s1197_s21 = sadd.s32 1, %s1134_s18   ;;  %s28_s22 = sadd.s32 1, %s1130_s17 }
   0x7   : > { %s25_s23 = ssub.s32 %s1134_s18, %s1197_s21  ;;  %p35_p0 = scmp.ne.s32.totalorder %s1130_s17, %s1126_s16 }
   0x8   : > { %p26_p1 = scmp.eq.s32.totalorder %s25_s23, 0  ;;  %p36_p2 = scmp.eq.s32.totalorder %s1134_s18, 0 }
   0x9   : > { %p41_p3 = scmp.ne.s32.totalorder %s1126_s16, %s1122_s15  ;;  %p42_p4 = scmp.eq.s32.totalorder %s1193_s19, 0 }
   0xa   : > { %s1209_s24 = scalar_select %p26_p1, %s1130_s17, %s28_s22  }
   0xb   : > { %p1211_p5 = por %p36_p2, %p35_p0  ;;  %p1215_p6 = por %p42_p4, %p41_p3 }
   0xc   : > { %p107_p7 = scmp.eq.s32.totalorder %s1193_s19, 1  ;;  %p113_p8 = scmp.eq.s32.totalorder %s849_s20, 1 }
   0xd   : > { %p961_p10 = scmp.lt.s32.totalorder %s1134_s18, 2  ;;  %s165_s29 = sand.u32 1, %s1130_s17  }
   0xe   : > { %p1222_p11 = por %p107_p7, %p35_p0  ;;  %p1226_p12 = por %p113_p8, %p41_p3 }
   0xf   : > { %s883_s30 = sshll.u32 %s1134_s18, 11  ;;  %s852_s5 = sshll.u32 %s165_s29, 7 }
  0x10   : > { %s1537_s27 = scalar_select %p1222_p11, 1, 0 }
  0x11   : > { %s1538_s28 = scalar_select %p1226_p12, 1, 0 }
  0x12   : > { %s1235_s8 = scalar_lea.hbm %s1529_s0, %s883_s30  ;;  %s169_s9 = scalar_lea.vmem [#allocation3], %s852_s5 }
  0x13   : > { %s176_s10 = sshll.u32 %s169_s9, 4  ;;  %p1239_p13 = pnand %p961_p10, %p1211_p5  ;;  %s1243_s10 = int_to_ptr.vmem [resolvable:$true] %s176_s10 }
  0x14   : > { %s1245_s12 = scalar_lea.sflag [#allocation4], %s165_s29  ;;  %s1038_s13 = scalar_lea.hbm %s1235_s8, 2048 }
  0x15   : > { %p1039_p0 = scmp.ne.s32.totalorder %s1235_s8, %s1038_s13  ;;  %p1040_p1 = pneg %p1239_p13 }
  0x16   : > { %s1043_s22 = scalar_lea.hbm %s1529_s0, 4096  ;;  %p1044_p4 = scmp.lt.u32.totalorder %s1235_s8, %s1529_s0 }
  0x17   : > { %p1041_p2 = pnand %p1040_p1, %p1039_p0  ;;  %p1045_p5 = scmp.lt.u32.totalorder %s1043_s22, %s1038_s13 }
  0x18   : > { %p1047_p8 = scmp.lt.u32.totalorder %s1038_s13, %s1235_s8 }
  0x19   : > { %p1042_p3 = pneg %p1041_p2  ;;  %p1046_p7 = por %p1045_p5, %p1044_p4 }
  0x1b   : > { %p1048_p10 = por %p1047_p8, %p1046_p7 }
  0x1d   : > { %p1049_p9 = pnand %p1048_p10, %p1042_p3 }
  0x1f   : > { %1052 = shalt.err (!%p1049_p9)
}
  0x20   : > { %s1053_s29 = scalar_lea.vmem %s1243_s10, 2048  ;;  %s1136_s30 = smov [#allocation3]  }
  0x21   : > { %p1054_p0 = scmp.ne.s32.totalorder %s1243_s10, %s1053_s29  ;;  %s1058_s5 = sshll.u32 %s1136_s30, 4  ;;  %s1059_s5 = int_to_ptr.vmem [resolvable:$false] %s1058_s5 }
  0x22   : > { %s1060_s6 = scalar_lea.vmem %s1059_s5, 4096  ;;  %p1061_p11 = scmp.lt.s32.totalorder %s1243_s10, %s1059_s5 }
  0x23   : > { %p1056_p2 = pnand %p1054_p0, %p1040_p1  ;;  %p1062_p4 = scmp.lt.s32.totalorder %s1060_s6, %s1053_s29 }
  0x25   : > { %p1057_p12 = pneg %p1056_p2  ;;  %p1063_p5 = por %p1062_p4, %p1061_p11 }
  0x27   : > { %p1064_p7 = pnand %p1063_p5, %p1057_p12 }
  0x29   : > { %1067 = shalt.err (!%p1064_p7)
}
  0x2a   : > { %s1137_s7 = smov 256   ;;  %s1138_s9 = smov 16  }
  0x2b   : > { %956 = dma.hbm_to_vmem [thread:$0]  (!%p1239_p13), %s1235_s8, 2048, %s1243_s10, %s1245_s12, %s1137_s7, %s1137_s7, %s1138_s9  }
  0x2c   : > { %p855_p9 = scmp.ge.s32.totalorder %s1134_s18, 1  ;;  %p184_p1 = scmp.lt.s32.totalorder %s1134_s18, 3 }
  0x2e   : > { %p185_p3 = pnand %p855_p9, %p184_p1 }
  0x2f   : > { %s1276_s13 = sand.u32 (!%p185_p3), 1, %s1126_s16  }
  0x30   : > { %188 = sbr.rel (%p185_p3) target bundleno = 975 (0x3cf), region = 32  ;;  %s856_s14 = sshll.u32 (!%p185_p3), %s1276_s13, 7 }
  0x31   : > { %s191_s20 = scalar_lea.sflag (!%p185_p3), [#allocation4], %s1276_s13  ;;  %s1282_s22 = scalar_lea.vmem (!%p185_p3), [#allocation3], %s856_s14 }
  0x37   : > { %1113 = dma.done.wait (%p1215_p6), %s191_s20, 2048  }
  0x38   : > { %1115 = vsyncadd (%p1215_p6), %s191_s20, 4294965248  ;;  %v1289_v0 = vld [vmem:[%s1282_s22] sm:$0xff]  ;;  %v1292_v1 = vld [vmem:[%s1282_s22 + $0x8] sm:$0xff]  ;;  %v1139_v32 = vmov 0.0|0.0   ;;  %vm1140_vm0 = vmmov 0   ;;  %v1141_v33 = vmov 0.0  }
  0x39   : > { %v1295_v2 = vld [vmem:[%s1282_s22 + $0x10] sm:$0xff]  ;;  %v286_v3 = vmax.f32 %v1289_v0, %v1292_v1  ;;  %v245_v4 = vadd.f32 %v1292_v1, %v1289_v0  ;;  %v1302_v5 = vld [vmem:[%s1282_s22 + $0x18] sm:$0xff]  ;;  %v1315_v10 = vld [vmem:[%s1282_s22 + $0x20] sm:$0xff]  ;;  %937 = vmatprep.subr.bf16.mxu0 %v1139_v32  ;;  %920 = vmatprep.mubr.msk.f32.mxu0 %vm1140_vm0, %v1141_v33  ;;  %vm277_vm1 = vcmask 7168   ;;  %vm310_vm2 = vcmask 15368   ;;  %s1142_s11 = smov 127  }
  0x3a   : > { %v289_v6 = vmax.f32 %v1295_v2, %v1302_v5  ;;  %v248_v7 = vadd.f32 %v1302_v5, %v1295_v2  ;;  %v1309_v8 = vld [vmem:[%s1282_s22 + $0x30] sm:$0xff]  ;;  %v1312_v9 = vld [vmem:[%s1282_s22 + $0x38] sm:$0xff]  ;;  %v1318_v11 = vld [vmem:[%s1282_s22 + $0x28] sm:$0xff]  ;;  %vm328_vm3 = vcmask 523264   ;;  %vm411_vm4 = vcmask 31744   ;;  %p224_p6 = scmp.lt.s32.totalorder %s1193_s19, 1 }
  0x3b   : > { %287 = vmax.xlane.f32.xlu1 %v286_v3  ;;  %246 = vadd.xlane.f32.xlu0 %v245_v4  ;;  %v254_v12 = vadd.f32 %v1312_v9, %v1309_v8  ;;  %v251_v13 = vadd.f32 %v1318_v11, %v1315_v10  ;;  %v295_v14 = vmax.f32 %v1309_v8, %v1312_v9  ;;  %v1329_v16 = vld [vmem:[%s1282_s22 + $0x50] sm:$0xff]  ;;  %v1332_v17 = vld [vmem:[%s1282_s22 + $0x58] sm:$0xff]  ;;  %v1335_v18 = vld [vmem:[%s1282_s22 + $0x40] sm:$0xff]  ;;  %vm436_vm5 = vcmask 1043456   ;;  %s1448_s5 = scalar_lea.vmem [#allocation6], %s856_s14  ;;  %s885_s14 = sshll.u32 %s1193_s19, 11 }
  0x3c   : > { %v292_v15 = vmax.f32 %v1315_v10, %v1318_v11  ;;  %v1338_v19 = vld [vmem:[%s1282_s22 + $0x48] sm:$0xff]  ;;  %v260_v20 = vadd.f32 %v1332_v17, %v1329_v16  ;;  %v301_v22 = vmax.f32 %v1329_v16, %v1332_v17  ;;  %v1349_v24 = vld [vmem:[%s1282_s22 + $0x70] sm:$0xff]  ;;  %v1352_v25 = vld [vmem:[%s1282_s22 + $0x78] sm:$0xff]  ;;  %s225_s12 = scalar_select %p224_p6, %s1193_s19, 1 }
  0x3d   : > { %v257_v21 = vadd.f32 %v1338_v19, %v1335_v18  ;;  %v298_v23 = vmax.f32 %v1335_v18, %v1338_v19  ;;  %v1355_v26 = vld [vmem:[%s1282_s22 + $0x60] sm:$0xff]  ;;  %v1358_v27 = vld [vmem:[%s1282_s22 + $0x68] sm:$0xff]  ;;  %v266_v28 = vadd.f32 %v1352_v25, %v1349_v24  ;;  %v307_v30 = vmax.f32 %v1349_v24, %v1352_v25  ;;  %v410_v33 = vld [vmem:[%s1531_s2 + $0x38] sm:$0xff]  ;;  %s748_s6 = sshll.u32 %s1448_s5, 4  ;;  %s1475_s20 = scalar_lea.hbm %s1532_s3, %s885_s14  ;;  %s1477_s6 = int_to_ptr.vmem [resolvable:$true] %s748_s6 }
  0x3e   : > { %v263_v29 = vadd.f32 %v1358_v27, %v1355_v26  ;;  %v304_v31 = vmax.f32 %v1355_v26, %v1358_v27  ;;  %s884_s23 = sshll.u32 %s225_s12, 6  ;;  %s730_s19 = scalar_lea.sflag [#allocation5], %s1276_s13 }
  0x3f   : > { %290 = vmax.xlane.f32.xlu1 %v289_v6  ;;  %249 = vadd.xlane.f32.xlu0 %v248_v7  ;;  %s1424_s30 = scalar_lea.vmem %s1533_s4, %s884_s23  ;;  %s1068_s22 = scalar_lea.vmem %s1477_s6, 2048 }
  0x40   : > { %p1069_p11 = scmp.ne.s32.totalorder %s1477_s6, %s1068_s22  ;;  %p1540_p12 = scmp.ne.s32.totalorder %s1537_s27, 0 }
  0x41   : > { %s1144_s26 = smov [#allocation6]  }
  0x42   : > { %p1070_p13 = pnand %p1069_p11, %p1540_p12  ;;  %s1072_s8 = sshll.u32 %s1144_s26, 4  ;;  %s1073_s8 = int_to_ptr.vmem [resolvable:$false] %s1072_s8 }
  0x43   : > { %255 = vadd.xlane.f32.xlu1 %v254_v12  ;;  %252 = vadd.xlane.f32.xlu0 %v251_v13  ;;  %s1074_s10 = scalar_lea.vmem %s1073_s8, 4096  ;;  %p1075_p10 = scmp.lt.s32.totalorder %s1477_s6, %s1073_s8 }
  0x44   : > { %p1071_p8 = pneg %p1070_p13  ;;  %p1076_p0 = scmp.lt.s32.totalorder %s1074_s10, %s1068_s22 }
  0x46   : > { %p1077_p2 = por %p1076_p0, %p1075_p10 }
  0x47   : > { %296 = vmax.xlane.f32.xlu1 %v295_v14  ;;  %293 = vmax.xlane.f32.xlu0 %v292_v15  ;;  %v319_v14 = vld [vmem:[%s1530_s1] sm:$0xf] }
  0x48   : > { %v403_v15 = vld [vmem:[%s1531_s2] sm:$0xff]  ;;  %p1078_p4 = pnand %p1077_p2, %p1071_p8 }
  0x49   : > { %925 = vmatprep.mubr.msk.f32.mxu1 %vm411_vm4, %v403_v15 }
  0x4b   : > { %261 = vadd.xlane.f32.xlu1 %v260_v20  ;;  %258 = vadd.xlane.f32.xlu0 %v257_v21 }
  0x4f   : > { %302 = vmax.xlane.f32.xlu1 %v301_v22  ;;  %299 = vmax.xlane.f32.xlu0 %v298_v23  ;;  %v404_v23 = vld [vmem:[%s1531_s2 + $0x8] sm:$0xff] }
  0x53   : > { %267 = vadd.xlane.f32.xlu1 %v266_v28  ;;  %264 = vadd.xlane.f32.xlu0 %v263_v29  ;;  %v405_v28 = vld [vmem:[%s1531_s2 + $0x10] sm:$0xff]  ;;  %v406_v29 = vld [vmem:[%s1531_s2 + $0x18] sm:$0xff] }
  0x57   : > { %308 = vmax.xlane.f32.xlu1 %v307_v30  ;;  %305 = vmax.xlane.f32.xlu0 %v304_v31  ;;  %v407_v30 = vld [vmem:[%s1531_s2 + $0x20] sm:$0xff]  ;;  %v408_v31 = vld [vmem:[%s1531_s2 + $0x28] sm:$0xff] }
  0xc8   : > { %v288_v34 = vpop.xlane.xlu1 %287  ;;  %v247_v35 = vpop.xlane.xlu0 %246 }
  0xc9   : > { %v269_v36 = vmul.f32 0.00390625, %v247_v35 }
  0xcb   : > { %278 = vst.msk [vmem:[#allocation2] sm:$0xff] %vm277_vm1, %v269_v36 }
  0xcc   : > { %311 = vst.msk [vmem:[#allocation2] sm:$0xff] %vm310_vm2, %v288_v34  ;;  %v291_v37 = vpop.xlane.xlu1 %290  ;;  %v250_v38 = vpop.xlane.xlu0 %249 }
  0xcd   : > { %v270_v39 = vmul.f32 0.00390625, %v250_v38 }
  0xcf   : > { %279 = vst.msk [vmem:[#allocation2 + $0x8] sm:$0xff] %vm277_vm1, %v270_v39 }
  0xd0   : > { %312 = vst.msk [vmem:[#allocation2 + $0x8] sm:$0xff] %vm310_vm2, %v291_v37  ;;  %v256_v40 = vpop.xlane.xlu1 %255  ;;  %v253_v41 = vpop.xlane.xlu0 %252 }
  0xd1   : > { %v272_v42 = vmul.f32 0.00390625, %v256_v40  ;;  %v271_v43 = vmul.f32 0.00390625, %v253_v41 }
  0xd3   : > { %281 = vst.msk [vmem:[#allocation2 + $0x18] sm:$0xff] %vm277_vm1, %v272_v42  ;;  %280 = vst.msk [vmem:[#allocation2 + $0x10] sm:$0xff] %vm277_vm1, %v271_v43  ;;  %v320_v46 = vld [vmem:[#allocation2] sm:$0xff]  ;;  %v1143_v42 = vmov 0  }
  0xd4   : > { %v297_v44 = vpop.xlane.xlu1 %296  ;;  %v294_v45 = vpop.xlane.xlu0 %293  ;;  %1005 = vset.pattern.permute.xlu0 %v1143_v42  ;;  %1004 = vset.pattern.permute.xlu1 %v1143_v42 }
  0xd5   : > { %314 = vst.msk [vmem:[#allocation2 + $0x18] sm:$0xff] %vm310_vm2, %v297_v44  ;;  %313 = vst.msk [vmem:[#allocation2 + $0x10] sm:$0xff] %vm310_vm2, %v294_v45 }
  0xd7   : > { %v321_v47 = vld [vmem:[#allocation2 + $0x8] sm:$0xff] }
  0xd8   : > { %v262_v48 = vpop.xlane.xlu1 %261  ;;  %v259_v49 = vpop.xlane.xlu0 %258  ;;  %v938_v50 = vpack.c.bf16 %v321_v47, %v320_v46 }
  0xd9   : > { %v274_v51 = vmul.f32 0.00390625, %v262_v48  ;;  %v273_v52 = vmul.f32 0.00390625, %v259_v49 }
  0xda   : > { %939 = vmatpush3.bf16.msra.mxu0 %v938_v50 }
  0xdb   : > { %283 = vst.msk [vmem:[#allocation2 + $0x28] sm:$0xff] %vm277_vm1, %v274_v51  ;;  %282 = vst.msk [vmem:[#allocation2 + $0x20] sm:$0xff] %vm277_vm1, %v273_v52  ;;  %940 = vmatprep.subr.bf16.mxu0 %v1139_v32 }
  0xdc   : > { %v303_v53 = vpop.xlane.xlu1 %302  ;;  %v300_v54 = vpop.xlane.xlu0 %299  ;;  %v322_v55 = vld [vmem:[#allocation2 + $0x10] sm:$0xff]  ;;  %v323_v56 = vld [vmem:[#allocation2 + $0x18] sm:$0xff] }
  0xdd   : > { %316 = vst.msk [vmem:[#allocation2 + $0x28] sm:$0xff] %vm310_vm2, %v303_v53  ;;  %315 = vst.msk [vmem:[#allocation2 + $0x20] sm:$0xff] %vm310_vm2, %v300_v54  ;;  %v941_v57 = vpack.c.bf16 %v323_v56, %v322_v55 }
  0xdf   : > { %942 = vmatpush3.bf16.msra.mxu0 %v941_v57 }
  0xe0   : > { %v268_v58 = vpop.xlane.xlu1 %267  ;;  %v265_v59 = vpop.xlane.xlu0 %264  ;;  %943 = vmatprep.subr.bf16.mxu0 %v1139_v32 }
  0xe1   : > { %v276_v60 = vmul.f32 0.00390625, %v268_v58  ;;  %v275_v61 = vmul.f32 0.00390625, %v265_v59 }
  0xe3   : > { %285 = vst.msk [vmem:[#allocation2 + $0x38] sm:$0xff] %vm277_vm1, %v276_v60  ;;  %284 = vst.msk [vmem:[#allocation2 + $0x30] sm:$0xff] %vm277_vm1, %v275_v61 }
  0xe4   : > { %v309_v62 = vpop.xlane.xlu1 %308  ;;  %v306_v63 = vpop.xlane.xlu0 %305  ;;  %v324_v3 = vld [vmem:[#allocation2 + $0x20] sm:$0xff]  ;;  %v325_v4 = vld [vmem:[#allocation2 + $0x28] sm:$0xff] }
  0xe5   : > { %318 = vst.msk [vmem:[#allocation2 + $0x38] sm:$0xff] %vm310_vm2, %v309_v62  ;;  %317 = vst.msk [vmem:[#allocation2 + $0x30] sm:$0xff] %vm310_vm2, %v306_v63  ;;  %v944_v6 = vpack.c.bf16 %v325_v4, %v324_v3 }
  0xe7   : > { %945 = vmatpush3.bf16.msra.mxu0 %v944_v6 }
  0xe8   : > { %946 = vmatprep.subr.bf16.mxu0 %v1139_v32  ;;  %v409_v32 = vld [vmem:[%s1531_s2 + $0x30] sm:$0xff] }
  0xec   : > { %v326_v7 = vld [vmem:[#allocation2 + $0x30] sm:$0xff]  ;;  %v327_v12 = vld [vmem:[#allocation2 + $0x38] sm:$0xff] }
  0xed   : > { %v947_v13 = vpack.c.bf16 %v327_v12, %v326_v7 }
  0xef   : > { %948 = vmatpush3.bf16.msra.mxu0 %v947_v13 }
  0xf2   : > { %921 = vmatmul.mubr.msk.f32.vlgmr.msra.gmra.mrb[0].mxu0 %vm328_vm3, %v319_v14 }
 0x1c5   : > { %v398_v20 = vpop.f32.mrb[0].mxu0 }
 0x1c6   : > { %v402_v21 = vmax.f32 %v398_v20, 0.0  ;;  %v922_v22 = vpop.f32.mrb[1].mxu0 }
 0x1c8   : > { %923 = vmatprep.subr.msk.mxu1 %vm436_vm5, %v402_v21 }
 0x1c9   : > { %924 = vmatpush3.msk.msra.mxu1 %vm436_vm5, %v402_v21 }
 0x1ca   : > { %926 = vmatmul.mubr.msk.f32.vlgmr.msra.gmra.mrb[0].mxu1 %vm411_vm4, %v404_v23 }
 0x1cb   : > { %928 = vmatprep.mubr.msk.f32.mxu1 %vm411_vm4, %v405_v28 }
 0x1ce   : > { %929 = vmatmul.mubr.msk.f32.gmra.mrb[2].mxu1 %vm411_vm4, %v406_v29 }
 0x1cf   : > { %931 = vmatprep.mubr.msk.f32.mxu1 %vm411_vm4, %v407_v30 }
 0x1d2   : > { %932 = vmatmul.mubr.msk.f32.gmra.mrb[4].mxu1 %vm411_vm4, %v408_v31 }
 0x1d3   : > { %934 = vmatprep.mubr.msk.f32.mxu1 %vm411_vm4, %v409_v32 }
 0x1d6   : > { %935 = vmatmul.mubr.msk.f32.gmra.mrb[6].mxu1 %vm411_vm4, %v410_v33 }
 0x29d   : > { %v927_v34 = vpop.f32.mrb[0].mxu1 }
 0x29e   : > { %555 = vrot.lane.b32.xlu1 %v927_v34, %s1142_s11  ;;  %v506_v35 = vpop.f32.mrb[1].mxu1 }
 0x29f   : > { %553 = vrot.lane.b32.xlu0 %v506_v35, %s1142_s11 }
 0x2a1   : > { %v930_v36 = vpop.f32.mrb[2].mxu1 }
 0x2a2   : > { %559 = vrot.lane.b32.xlu1 %v930_v36, %s1142_s11  ;;  %v516_v37 = vpop.f32.mrb[3].mxu1 }
 0x2a5   : > { %v933_v38 = vpop.f32.mrb[4].mxu1 }
 0x2a6   : > { %557 = vrot.lane.b32.xlu1 %v516_v37, %s1142_s11  ;;  %v526_v39 = vpop.f32.mrb[5].mxu1 }
 0x2a7   : > { %561 = vrot.lane.b32.xlu0 %v526_v39, %s1142_s11 }
 0x2a9   : > { %v936_v40 = vpop.f32.mrb[6].mxu1 }
 0x2aa   : > { %563 = vrot.lane.b32.xlu1 %v933_v38, %s1142_s11  ;;  %v536_v41 = vpop.f32.mrb[7].mxu1 }
 0x2ab   : > { %565 = vrot.lane.b32.xlu0 %v536_v41, %s1142_s11 }
 0x2ae   : > { %567 = vrot.lane.b32.xlu1 %v936_v40, %s1142_s11 }
 0x310   : > { %v556_v43 = vpop.permute.xlu1 %555 }
 0x311   : > { %v578_v44 = vadd.f32 %v927_v34, %v556_v43  ;;  %v554_v45 = vpop.permute.xlu0 %553 }
 0x312   : > { %v577_v46 = vadd.f32 %v554_v45, %v506_v35 }
 0x313   : > { %v871_v47 = vmul.f32 -1.442695, %v578_v44 }
 0x314   : > { %v870_v48 = vmul.f32 -1.442695, %v577_v46  ;;  %v560_v49 = vpop.permute.xlu1 %559 }
 0x315   : > { %1006 = vpow2.f32 %v871_v47  ;;  %v580_v50 = vadd.f32 %v930_v36, %v560_v49 }
 0x316   : > { %1008 = vpow2.f32 %v870_v48 }
 0x317   : > { %v873_v51 = vmul.f32 -1.442695, %v580_v50 }
 0x318   : > { %v558_v52 = vpop.permute.xlu1 %557 }
 0x319   : > { %1010 = vpow2.f32 %v873_v51  ;;  %v579_v53 = vadd.f32 %v558_v52, %v516_v37  ;;  %v562_v54 = vpop.permute.xlu0 %561 }
 0x31a   : > { %v581_v55 = vadd.f32 %v562_v54, %v526_v39 }
 0x31b   : > { %v872_v56 = vmul.f32 -1.442695, %v579_v53 }
 0x31c   : > { %v874_v57 = vmul.f32 -1.442695, %v581_v55  ;;  %v564_v58 = vpop.permute.xlu1 %563 }
 0x31d   : > { %1012 = vpow2.f32 %v872_v56  ;;  %v582_v59 = vadd.f32 %v933_v38, %v564_v58  ;;  %v566_v60 = vpop.permute.xlu0 %565 }
 0x31e   : > { %1014 = vpow2.f32 %v874_v57  ;;  %v583_v61 = vadd.f32 %v566_v60, %v536_v41 }
 0x31f   : > { %v1007_v62 = vpop.eup %1006  ;;  %v875_v63 = vmul.f32 -1.442695, %v582_v59 }
 0x320   : > { %v1009_v3 = vpop.eup %1008  ;;  %v610_v4 = vadd.f32 1.0, %v1007_v62  ;;  %v876_v6 = vmul.f32 -1.442695, %v583_v61  ;;  %v568_v7 = vpop.permute.xlu1 %567 }
 0x321   : > { %v609_v12 = vadd.f32 1.0, %v1009_v3  ;;  %1016 = vpow2.f32 %v875_v63  ;;  %v584_v13 = vadd.f32 %v936_v40, %v568_v7 }
 0x322   : > { %1018 = vrcp.f32 %v610_v4 }
 0x323   : > { %v1011_v14 = vpop.eup %1010  ;;  %1020 = vrcp.f32 %v609_v12  ;;  %v877_v15 = vmul.f32 -1.442695, %v584_v13 }
 0x324   : > { %v612_v20 = vadd.f32 1.0, %v1011_v14  ;;  %1022 = vpow2.f32 %v876_v6 }
 0x325   : > { %1024 = vpow2.f32 %v877_v15 }
 0x326   : > { %1026 = vrcp.f32 %v612_v20 }
 0x327   : > { %v1013_v21 = vpop.eup %1012 }
 0x328   : > { %v1015_v22 = vpop.eup %1014  ;;  %v611_v23 = vadd.f32 1.0, %v1013_v21 }
 0x329   : > { %v613_v28 = vadd.f32 1.0, %v1015_v22 }
 0x32a   : > { %1028 = vrcp.f32 %v611_v23 }
 0x32b   : > { %v1017_v29 = vpop.eup %1016  ;;  %1030 = vrcp.f32 %v613_v28 }
 0x32c   : > { %v1019_v30 = vpop.eup %1018  ;;  %v614_v31 = vadd.f32 1.0, %v1017_v29 }
 0x32d   : > { %v1021_v32 = vpop.eup %1020  ;;  %634 = vst.msk [vmem:[%s1424_s30 + $0x8] sm:$0xff] %vm277_vm1, %v1019_v30  ;;  %664 = vperm.xlu1 %1004, %v1019_v30  }
 0x32e   : > { %v1023_v33 = vpop.eup %1022  ;;  %633 = vst.msk [vmem:[%s1424_s30] sm:$0xff] %vm277_vm1, %v1021_v32  ;;  %1032 = vrcp.f32 %v614_v31  ;;  %659 = vperm.xlu0 %1005, %v1021_v32  }
 0x32f   : > { %v1025_v34 = vpop.eup %1024  ;;  %v615_v35 = vadd.f32 1.0, %v1023_v33 }
 0x330   : > { %v1027_v36 = vpop.eup %1026  ;;  %v616_v37 = vadd.f32 1.0, %v1025_v34 }
 0x331   : > { %636 = vst.msk [vmem:[%s1424_s30 + $0x18] sm:$0xff] %vm277_vm1, %v1027_v36  ;;  %1034 = vrcp.f32 %v615_v35 }
 0x332   : > { %1036 = vrcp.f32 %v616_v37  ;;  %674 = vperm.xlu0 %1005, %v1027_v36  }
 0x334   : > { %v1029_v38 = vpop.eup %1028 }
 0x335   : > { %v1031_v39 = vpop.eup %1030  ;;  %635 = vst.msk [vmem:[%s1424_s30 + $0x10] sm:$0xff] %vm277_vm1, %v1029_v38  ;;  %669 = vperm.xlu1 %1004, %v1029_v38  }
 0x336   : > { %637 = vst.msk [vmem:[%s1424_s30 + $0x20] sm:$0xff] %vm277_vm1, %v1031_v39 }
 0x338   : > { %v1033_v40 = vpop.eup %1032 }
 0x339   : > { %638 = vst.msk [vmem:[%s1424_s30 + $0x28] sm:$0xff] %vm277_vm1, %v1033_v40  ;;  %679 = vperm.xlu1 %1004, %v1031_v39   ;;  %684 = vperm.xlu0 %1005, %v1033_v40  }
 0x33b   : > { %v1035_v41 = vpop.eup %1034 }
 0x33c   : > { %v1037_v42 = vpop.eup %1036  ;;  %639 = vst.msk [vmem:[%s1424_s30 + $0x30] sm:$0xff] %vm277_vm1, %v1035_v41 }
 0x33d   : > { %640 = vst.msk [vmem:[%s1424_s30 + $0x38] sm:$0xff] %vm277_vm1, %v1037_v42  ;;  %694 = vperm.xlu0 %1005, %v1037_v42   ;;  %689 = vperm.xlu1 %1004, %v1035_v41  }
 0x3ac   : > { %v665_v43 = vpop.permute.xlu1 %664 }
 0x3ad   : > { %v699_v44 = vmul.f32 %v665_v43, %v1295_v2  ;;  %v700_v45 = vmul.f32 %v665_v43, %v1302_v5  ;;  %v660_v46 = vpop.permute.xlu0 %659 }
 0x3ae   : > { %v697_v47 = vmul.f32 %v660_v46, %v1289_v0  ;;  %v698_v48 = vmul.f32 %v660_v46, %v1292_v1 }
 0x3af   : > { %715 = vst [vmem:[%s1448_s5 + $0x10] sm:$0xff] %v699_v44  ;;  %716 = vst [vmem:[%s1448_s5 + $0x18] sm:$0xff] %v700_v45 }
 0x3b0   : > { %713 = vst [vmem:[%s1448_s5] sm:$0xff] %v697_v47  ;;  %714 = vst [vmem:[%s1448_s5 + $0x8] sm:$0xff] %v698_v48 }
 0x3b1   : > { %v675_v2 = vpop.permute.xlu0 %674 }
 0x3b2   : > { %v703_v0 = vmul.f32 %v675_v2, %v1309_v8  ;;  %v704_v1 = vmul.f32 %v675_v2, %v1312_v9 }
 0x3b4   : > { %719 = vst [vmem:[%s1448_s5 + $0x30] sm:$0xff] %v703_v0  ;;  %720 = vst [vmem:[%s1448_s5 + $0x38] sm:$0xff] %v704_v1  ;;  %v670_v5 = vpop.permute.xlu1 %669 }
 0x3b5   : > { %v701_v49 = vmul.f32 %v670_v5, %v1315_v10  ;;  %v702_v50 = vmul.f32 %v670_v5, %v1318_v11 }
 0x3b7   : > { %717 = vst [vmem:[%s1448_s5 + $0x20] sm:$0xff] %v701_v49  ;;  %718 = vst [vmem:[%s1448_s5 + $0x28] sm:$0xff] %v702_v50 }
 0x3b8   : > { %v680_v51 = vpop.permute.xlu1 %679  ;;  %v685_v52 = vpop.permute.xlu0 %684 }
 0x3b9   : > { %v705_v8 = vmul.f32 %v680_v51, %v1335_v18  ;;  %v706_v53 = vmul.f32 %v680_v51, %v1338_v19  ;;  %v707_v9 = vmul.f32 %v685_v52, %v1329_v16  ;;  %v708_v54 = vmul.f32 %v685_v52, %v1332_v17 }
 0x3bb   : > { %721 = vst [vmem:[%s1448_s5 + $0x40] sm:$0xff] %v705_v8  ;;  %722 = vst [vmem:[%s1448_s5 + $0x48] sm:$0xff] %v706_v53 }
 0x3bc   : > { %723 = vst [vmem:[%s1448_s5 + $0x50] sm:$0xff] %v707_v9  ;;  %724 = vst [vmem:[%s1448_s5 + $0x58] sm:$0xff] %v708_v54  ;;  %v690_v10 = vpop.permute.xlu1 %689  ;;  %v695_v11 = vpop.permute.xlu0 %694 }
 0x3bd   : > { %v709_v16 = vmul.f32 %v690_v10, %v1355_v26  ;;  %v710_v17 = vmul.f32 %v690_v10, %v1358_v27  ;;  %v711_v18 = vmul.f32 %v695_v11, %v1349_v24  ;;  %v712_v19 = vmul.f32 %v695_v11, %v1352_v25 }
 0x3bf   : > { %725 = vst [vmem:[%s1448_s5 + $0x60] sm:$0xff] %v709_v16  ;;  %726 = vst [vmem:[%s1448_s5 + $0x68] sm:$0xff] %v710_v17 }
 0x3c0   : > { %727 = vst [vmem:[%s1448_s5 + $0x70] sm:$0xff] %v711_v18  ;;  %728 = vst [vmem:[%s1448_s5 + $0x78] sm:$0xff] %v712_v19 }
 0x3c1   : > { %1081 = shalt.err (!%p1078_p4)
}
 0x3c2   : > { %s1082_s11 = scalar_lea.hbm %s1475_s20, 2048  ;;  %s1086_s25 = scalar_lea.hbm %s1532_s3, 4096 }
 0x3c3   : > { %p1083_p5 = scmp.ne.s32.totalorder %s1475_s20, %s1082_s11  ;;  %p1087_p1 = scmp.lt.u32.totalorder %s1475_s20, %s1532_s3 }
 0x3c4   : > { %p1088_p3 = scmp.lt.u32.totalorder %s1086_s25, %s1082_s11  ;;  %p1090_p11 = scmp.lt.u32.totalorder %s1082_s11, %s1475_s20 }
 0x3c5   : > { %p1084_p7 = pnand %p1083_p5, %p1540_p12 }
 0x3c6   : > { %p1089_p6 = por %p1088_p3, %p1087_p1 }
 0x3c7   : > { %p1085_p9 = pneg %p1084_p7 }
 0x3c8   : > { %p1091_p13 = por %p1090_p11, %p1089_p6 }
 0x3ca   : > { %p1092_p8 = pnand %p1091_p13, %p1085_p9 }
 0x3cc   : > { %1095 = shalt.err (!%p1092_p8)
}
 0x3cd   : > { %s1145_s5 = smov 256   ;;  %s1146_s14 = smov 16  }
 0x3ce   : > { %951 = dma.vmem_to_hbm [thread:$0]  (%p1540_p12), %s1477_s6, 2048, %s1475_s20, %s730_s19, %s1145_s5, %s1145_s5, %s1146_s14  }
 0x3cf PF: > { %s766_s7 = sand.u32 1, %s1122_s15   ;;  %p1541_p10 = scmp.ne.s32.totalorder %s1538_s28, 0 }
 0x3d0   : > { %p1542_p0 = scmp.ge.s32.totalorder %s1134_s18, 2  ;;  %s767_s9 = scalar_lea.sflag [#allocation5], %s766_s7 }
 0x3d2   : > { %p958_p2 = pnand %p1542_p0, %p1541_p10 }
 0x3d4   : > { %1117 = dma.done.wait (!%p958_p2), %s767_s9, 2048  }
 0x3d5   : > { %1119 = vsyncadd (!%p958_p2), %s767_s9, 4294965248  ;;  %p18_p4 = scmp.ge.s32.totalorder %s1197_s21, 4   ;;  %s1543_s15 = smov %s1126_s16 }
 0x3d6   : > { %s1544_s16 = smov %s1130_s17  ;;  %s1545_s17 = smov %s1209_s24 }
 0x3d7   : > { %s1546_s18 = smov %s1197_s21  ;;  %20 = sbr.rel (!%p18_p4) target bundleno = 5 (0x5), region = 89 }
 0x3de   :  { %780 = vsyncpa [#allocation4], 1 }
 0x3df   :  { %782 = vsyncpa [#allocation4 + $0x1], 1 }
 0x3e0   :  { %783 = vsyncpa [#allocation5], 1 }
 0x3e1   :  { %785 = vsyncpa [#allocation5 + $0x1], 1 }

</bundles_post_ra>
